<compile_context>
chip_gen: v5e
topology: v5e:2x2
jax: 0.10.0
libtpu: 0.0.40
codegen_flags: <defaults>
</compile_context>

<pallas_src>
import jax
import jax.numpy as jnp
from jax.experimental import pallas as pl
from jax.experimental.pallas import tpu as pltpu  # noqa: F401  (TPU backend; params not needed at this size)

PAD_ID = 0  # utils.PAD_ID

# -------- small config consistent with the module's __init__ --------
BATCH = 2
MAXLEN = 8                 # T (sequence length / "timest")
EMB_DIM = 16
POS_DIM = 4
NER_DIM = 4
POSITION_DIM = 4
HIDDEN = 32                # args.hidden
WINDOW = 3                 # args.window_size
INPUT_SIZE = EMB_DIM + POSITION_DIM * 2 + POS_DIM + NER_DIM   # 32
T_OUT = MAXLEN - WINDOW + 1                                    # 6
N_PIECES = 3
LANES = 128                                                    # pad W*H = 96 -> 128 lanes
assert WINDOW * HIDDEN <= LANES


def pcnn_kernel(x_ref, m_ref, w_ref, b_ref, o_ref):
    """Whole batch + all 3 pieces in one invocation (no grid).

    x_ref : (B*3*T, D)  f32  embeddings replicated per piece, rows ordered (b, p, t)
    m_ref : (B*3*T, 1)  f32  matching piece masks (one value per row)
    w_ref : (D, 128)    f32  [W_0 | W_1 | W_2 | 0-pad], W_w[d, h] = conv_weight[h, 0, d, w]
    b_ref : (1, H)      f32  conv bias
    o_ref : (B*3, H)    f32  tanh(maxpool(conv)) per (batch, piece) row
    """
    # Piecewise masking (VPU lane-broadcast), then ONE fused MXU matmul covering every
    # (batch, piece, window) combination.
    xm = x_ref[...] * m_ref[...]                                           # (B*3*T, D)
    proj = jnp.dot(xm, w_ref[...], preferred_element_type=jnp.float32)     # (B*3*T, 128)

    # Tile-aligned split of the row axis into (batch*piece, time) groups of MAXLEN (=8) rows.
    proj = proj.reshape(BATCH * N_PIECES, MAXLEN, LANES)

    # Window accumulation: scores[g, t, h] = sum_w proj[g, t + w, w*H + h].
    scores = proj[:, 0:T_OUT, 0:HIDDEN]
    for w in range(1, WINDOW):                                             # static unrolled loop
        scores = scores + proj[:, w:w + T_OUT, w * HIDDEN:(w + 1) * HIDDEN]

    # AdaptiveMaxPool1d(1) over time; bias hoisted after the max (max(s)+b == max(s+b)).
    pooled = jnp.max(scores, axis=1)                                       # (B*3, H)
    o_ref[...] = jnp.tanh(pooled + b_ref[...])                             # single dense store


def pcnn_forward(inputs, input_embs, weight, bias):
    """inputs = (words, pos, ner, subj_pos, obj_pos), each (B, T) int32.
       input_embs: (B, T, D) float32.
       weight: (H, 1, D, W) float32 (torch Conv1d layout). bias: (H,)."""
    words, pos, ner, subj_pos, obj_pos = inputs
    B, T = words.shape
    # TODO(synk): torch forward computes seq_lens from `words` via .tolist(); it is unused
    # downstream so it is not reproduced. Dropout is identity in eval mode.
    piece1 = (subj_pos <= 0) & (obj_pos <= 0)
    piece2 = (obj_pos > 0) ^ (subj_pos > 0)
    piece3 = (subj_pos >= 0) & (obj_pos >= 0)
    masks = jnp.stack([piece1, piece2, piece3], axis=1).astype(jnp.float32)      # (B, 3, T)

    # Layout plumbing (free XLA reshapes, outside the kernel): stack (batch, piece, time)
    # into the matmul row axis; row index = b*(3*T) + p*T + t.
    x_rows = jnp.broadcast_to(
        input_embs[:, None, :, :], (B, N_PIECES, T, INPUT_SIZE)
    ).reshape(B * N_PIECES * T, INPUT_SIZE)
    m_rows = masks.reshape(B * N_PIECES * T, 1)

    # Conv1d weight (H, 1, D, W) -> lane-concatenated (D, W*H), zero-padded to 128 lanes.
    # w_cat[d, w*H + h] == weight[h, 0, d, w]
    w_cat = jnp.transpose(weight[:, 0, :, :], (1, 2, 0)).reshape(INPUT_SIZE, WINDOW * HIDDEN)
    w_pad = jnp.pad(w_cat, ((0, 0), (0, LANES - WINDOW * HIDDEN)))
    bias2d = bias.reshape(1, HIDDEN)

    # Single kernel invocation (no grid): total working set is a few KB, so per-grid-step
    # overhead dominates any pipelining benefit. For large batches, reintroduce a leading
    # batch grid axis marked "parallel" (v7x has 2 TensorCores).
    # NOTE: operands kept in f32 to match the reference tightly; for v6e/v7x at larger
    # sizes, cast x_rows / w_pad to bfloat16 here and keep the f32 dot accumulator.
    out = pl.pallas_call(
        pcnn_kernel,
        out_shape=jax.ShapeDtypeStruct((B * N_PIECES, HIDDEN), jnp.float32),
    )(x_rows, m_rows, w_pad, bias2d)

    # Rows are (b, p)-ordered, so this free XLA reshape is exactly
    # torch.cat([piece1, piece2, piece3], dim=1).
    return out.reshape(B, N_PIECES * HIDDEN)


def pcnn_reference(inputs, input_embs, weight, bias):
    """Pure-JAX reference mirroring the torch forward (eval mode)."""
    words, pos, ner, subj_pos, obj_pos = inputs
    piece_masks = [
        (subj_pos <= 0) & (obj_pos <= 0),
        (obj_pos > 0) ^ (subj_pos > 0),
        (subj_pos >= 0) & (obj_pos >= 0),
    ]
    outs = []
    for m in piece_masks:
        xm = input_embs * m[:, :, None].astype(jnp.float32)          # (B, T, D)
        scores = jnp.zeros((BATCH, T_OUT, HIDDEN), jnp.float32)
        for w in range(WINDOW):
            scores = scores + jnp.einsum(
                "btd,hd->bth", xm[:, w:w + T_OUT, :], weight[:, 0, :, w])
        scores = scores + bias
        outs.append(jnp.tanh(jnp.max(scores, axis=1)))               # (B, H)
    return jnp.concatenate(outs, axis=1)                             # (B, 3H)


if __name__ == "__main__":
    key = jax.random.PRNGKey(0)
    k_emb, k_w, k_b, k_sp, k_op, k_words = jax.random.split(key, 6)

    # Deterministic synthetic parameters (Conv1d(in=1, out=HIDDEN, kernel=(D, W))).
    weight = 0.1 * jax.random.normal(k_w, (HIDDEN, 1, INPUT_SIZE, WINDOW), jnp.float32)
    bias = 0.1 * jax.random.normal(k_b, (HIDDEN,), jnp.float32)

    # Deterministic synthetic inputs.
    input_embs = jax.random.normal(k_emb, (BATCH, MAXLEN, INPUT_SIZE), jnp.float32)
    words = jax.random.randint(k_words, (BATCH, MAXLEN), 0, 50, jnp.int32)
    pos = jnp.zeros((BATCH, MAXLEN), jnp.int32)
    ner = jnp.zeros((BATCH, MAXLEN), jnp.int32)
    subj_pos = jax.random.randint(k_sp, (BATCH, MAXLEN), -3, 4, jnp.int32)
    obj_pos = jax.random.randint(k_op, (BATCH, MAXLEN), -3, 4, jnp.int32)
    inputs = (words, pos, ner, subj_pos, obj_pos)

    out = pcnn_forward(inputs, input_embs, weight, bias)
    out = jax.block_until_ready(out)

    ref = pcnn_reference(inputs, input_embs, weight, bias)
    assert out.shape == (BATCH, 3 * HIDDEN)
    assert jnp.allclose(out, ref, atol=1e-4, rtol=1e-4), "Pallas output mismatch vs reference"

    print("KERNEL_OK")
</pallas_src>

<mosaic_0001>
module attributes {stable_mosaic.version = 11 : i64} {
  func.func @pcnn_kernel(%arg0: memref<48x32xf32, #tpu.memory_space<vmem>>, %arg1: memref<48x1xf32, #tpu.memory_space<vmem>>, %arg2: memref<32x128xf32, #tpu.memory_space<vmem>>, %arg3: memref<1x32xf32, #tpu.memory_space<vmem>>, %arg4: memref<6x32xf32, #tpu.memory_space<vmem>>) attributes {dimension_semantics = [], scalar_prefetch = 0 : i64, scratch_operands = 0 : i64, tpu.core_type = #tpu.core_type<tc>} {
    %c0 = arith.constant 0 : index
    %c0_0 = arith.constant 0 : index
    %0 = vector.load %arg0[%c0, %c0_0] : memref<48x32xf32, #tpu.memory_space<vmem>>, vector<48x32xf32>
    %c0_1 = arith.constant 0 : index
    %c0_2 = arith.constant 0 : index
    %1 = vector.load %arg1[%c0_1, %c0_2] : memref<48x1xf32, #tpu.memory_space<vmem>>, vector<48x1xf32>
    %2 = vector.broadcast %1 : vector<48x1xf32> to vector<48x32xf32>
    %3 = arith.mulf %0, %2 : vector<48x32xf32>
    %c0_3 = arith.constant 0 : index
    %c0_4 = arith.constant 0 : index
    %4 = vector.load %arg2[%c0_3, %c0_4] : memref<32x128xf32, #tpu.memory_space<vmem>>, vector<32x128xf32>
    %cst = arith.constant dense<0.000000e+00> : vector<48x128xf32>
    %5 = tpu.matmul %3, %4, %cst {dimension_numbers = #tpu.dot_dimension_numbers<[1], [0], [0], [1], [0, 0, 1, 1], [], []>} : vector<48x32xf32>, vector<32x128xf32>, vector<48x128xf32> -> vector<48x128xf32>
    %6 = vector.shape_cast %5 : vector<48x128xf32> to vector<6x8x128xf32>
    %7 = vector.extract_strided_slice %6 {offsets = [0, 0, 0], sizes = [6, 6, 32], strides = [1, 1, 1]} : vector<6x8x128xf32> to vector<6x6x32xf32>
    %8 = vector.extract_strided_slice %6 {offsets = [0, 1, 32], sizes = [6, 6, 32], strides = [1, 1, 1]} : vector<6x8x128xf32> to vector<6x6x32xf32>
    %9 = arith.addf %7, %8 : vector<6x6x32xf32>
    %10 = vector.extract_strided_slice %6 {offsets = [0, 2, 64], sizes = [6, 6, 32], strides = [1, 1, 1]} : vector<6x8x128xf32> to vector<6x6x32xf32>
    %11 = arith.addf %9, %10 : vector<6x6x32xf32>
    %cst_5 = arith.constant dense<0xFF800000> : vector<6x32xf32>
    %12 = vector.multi_reduction <maximumf>, %11, %cst_5 [1] : vector<6x6x32xf32> to vector<6x32xf32>
    %c0_6 = arith.constant 0 : index
    %c0_7 = arith.constant 0 : index
    %13 = vector.load %arg3[%c0_6, %c0_7] : memref<1x32xf32, #tpu.memory_space<vmem>>, vector<1x32xf32>
    %14 = vector.broadcast %13 : vector<1x32xf32> to vector<6x32xf32>
    %15 = arith.addf %12, %14 : vector<6x32xf32>
    %16 = math.tanh %15 : vector<6x32xf32>
    %c0_8 = arith.constant 0 : index
    %c0_9 = arith.constant 0 : index
    %17 = vector.load %arg4[%c0_8, %c0_9] : memref<6x32xf32, #tpu.memory_space<vmem>>, vector<6x32xf32>
    tpu.vector_store %arg4[%c0_8, %c0_9], %16 {strides = array<i32>} : memref<6x32xf32, #tpu.memory_space<vmem>>, vector<6x32xf32>,
    return
  }
}

</mosaic_0001>

<bundles_post_ra>
// kernel: tpu_custom_call.1
= control target key start
LH: loop header
LB: loop body
LE: loop exit
PB: predicated region body
PF: predicated region fallthrough
CT: control target
= control target key end

     0   :  { %v352_v2 = vmov 0   ;;  %s448_s0 = inlined_call_operand.vmem [shape: f32[48,32], index: 0, kind: input, shape index: {}]   ;;  %s449_s1 = inlined_call_operand.vmem [shape: f32[48,1], index: 1, kind: input, shape index: {}]   ;;  %s450_s2 = inlined_call_operand.vmem [shape: f32[32,128], index: 2, kind: input, shape index: {}]   ;;  %s451_s3 = inlined_call_operand.vmem [shape: f32[1,32], index: 3, kind: input, shape index: {}]   ;;  %s452_s4 = inlined_call_operand.hbm [shape: f32[6,32], index: 4, kind: output, shape index: {}]  }
   0x1   :  { %v28_v0 = vld [vmem:[%s449_s1 + $0x20] sm:$0xff]  ;;  %v26_v1 = vld [vmem:[%s449_s1 + $0x10] sm:$0xff]  ;;  %312 = vset.pattern.permute.xlu2 %v352_v2  ;;  %310 = vset.pattern.permute.xlu0 %v352_v2  ;;  %v27_v3 = vld [vmem:[%s449_s1 + $0x18] sm:$0xff] }
   0x2   :  { %52 = vperm.xlu0 %310, %v28_v0   ;;  %42 = vperm.xlu2 %312, %v26_v1  }
   0x3   :  { %9 = vsyncpa [#allocation3], 0  ;;  %311 = vset.pattern.permute.xlu1 %v352_v2  ;;  %v25_v4 = vld [vmem:[%s449_s1 + $0x8] sm:$0xff]  ;;  %v24_v5 = vld [vmem:[%s449_s1] sm:$0xff]  ;;  %vm70_vm0 = vcmask 261120   ;;  %s353_s19 = smov 96  }
   0x4   :  { %47 = vperm.xlu1 %311, %v27_v3   ;;  %v29_v6 = vld [vmem:[%s449_s1 + $0x28] sm:$0xff]  ;;  %v69_v7 = vld [vmem:[%s450_s2 + $0x18] sm:$0xff]  ;;  %v68_v8 = vld [vmem:[%s450_s2 + $0x10] sm:$0xff]  ;;  %s354_s20 = smov 64   ;;  %vm190_vm1 = vcmask 259072   ;;  %vm256_vm2 = vcmask 1041409  }
   0x5   :  { %101 = vmatpush.msra.mxu0 %v69_v7  ;;  %296 = vmatpush.msra.mxu3 %v69_v7  ;;  %v67_v9 = vld [vmem:[%s450_s2 + $0x8] sm:$0xff]  ;;  %v66_v10 = vld [vmem:[%s450_s2] sm:$0xff]  ;;  %v21_v17 = vld [vmem:[%s448_s0 + $0x18] sm:$0xff]  ;;  %vm259_vm3 = vcmask 1042434   ;;  %vm262_vm4 = vcmask 1043459   ;;  %vm265_vm5 = vcmask 1044484  }
   0x6   :  { %294 = vmatpush.msra.mxu1 %v69_v7  ;;  %295 = vmatpush.msra.mxu2 %v69_v7  ;;  %v18_v12 = vld [vmem:[%s448_s0] sm:$0xff]  ;;  %v19_v21 = vld [vmem:[%s448_s0 + $0x8] sm:$0xff]  ;;  %v20_v27 = vld [vmem:[%s448_s0 + $0x10] sm:$0xff]  ;;  %s279_s25 = sshll.u32 %s452_s4, 4  ;;  %vm268_vm6 = vcmask 1045509   ;;  %s280_s25 = int_to_ptr.hbm [resolvable:$true] %s279_s25 }
   0x7   :  { %102 = vmatpush.msra.mxu0 %v68_v8  ;;  %299 = vmatpush.msra.mxu3 %v68_v8  ;;  %v22_v15 = vld [vmem:[%s448_s0 + $0x20] sm:$0xff]  ;;  %v23_v23 = vld [vmem:[%s448_s0 + $0x28] sm:$0xff] }
   0x8   :  { %297 = vmatpush.msra.mxu1 %v68_v8  ;;  %298 = vmatpush.msra.mxu2 %v68_v8 }
   0x9   :  { %103 = vmatpush.msra.mxu0 %v67_v9  ;;  %302 = vmatpush.msra.mxu3 %v67_v9 }
   0xa   :  { %37 = vperm.xlu0 %310, %v25_v4   ;;  %32 = vperm.xlu2 %312, %v24_v5  }
   0xb   :  { %300 = vmatpush.msra.mxu1 %v67_v9  ;;  %301 = vmatpush.msra.mxu2 %v67_v9 }
   0xc   :  { %57 = vperm.xlu1 %311, %v29_v6   ;;  %104 = vmatpush.msra.mxu0 %v66_v10 }
   0xd   :  { %305 = vmatpush.msra.mxu3 %v66_v10  ;;  %303 = vmatpush.msra.mxu1 %v66_v10 }
   0xe   :  { %304 = vmatpush.msra.mxu2 %v66_v10 }
  0x5c   :  { %v43_v11 = vpop.permute.xlu2 %42 }
  0x5d   :  { %v62_v28 = vmul.f32 %v43_v11, %v20_v27 }
  0x64   :  { %v33_v13 = vpop.permute.xlu2 %32 }
  0x65   :  { %v60_v14 = vmul.f32 %v33_v13, %v18_v12 }
  0x67   :  { %288 = vmatmul.msk.f32.vlgmr.msra.gmra.mxu0 %vm70_vm0, %v60_v14 }
  0x74   :  { %v53_v16 = vpop.permute.xlu0 %52 }
  0x75   :  { %v64_v18 = vmul.f32 %v53_v16, %v22_v15 }
  0x76   :  { %v48_v19 = vpop.permute.xlu1 %47 }
  0x77   :  { %v63_v20 = vmul.f32 %v48_v19, %v21_v17  ;;  %292 = vmatmul.msk.f32.vlgmr.msra.gmra.mxu3 %vm70_vm0, %v64_v18 }
  0x79   :  { %291 = vmatmul.msk.f32.vlgmr.msra.gmra.mxu2 %vm70_vm0, %v63_v20 }
  0x7c   :  { %v38_v22 = vpop.permute.xlu0 %37 }
  0x7d   :  { %v61_v24 = vmul.f32 %v38_v22, %v19_v21 }
  0x7e   :  { %v58_v25 = vpop.permute.xlu1 %57 }
  0x7f   :  { %v65_v26 = vmul.f32 %v58_v25, %v23_v23  ;;  %289 = vmatmul.msk.f32.vlgmr.msra.gmra.mxu1 %vm70_vm0, %v61_v24 }
  0x81   :  { %293 = vmatmul.msk.f32.gmra.mxu3 %vm70_vm0, %v65_v26 }
  0x87   :  { %290 = vmatmul.msk.f32.gmra.mxu1 %vm70_vm0, %v62_v28 }
  0xe4   :  { %v106_v29 = vpop.f32.mrf.mxu0 }
  0xe5   :  { %v130_v30 = vrot.slane %v106_v29, 1  ;;  %v160_v31 = vrot.slane %v106_v29, 2 }
  0xe7   :  { %136 = vrot.lane.b32.xlu2 %v130_v30, %s353_s19 }
  0xef   :  { %166 = vrot.lane.b32.xlu2 %v160_v31, %s354_s20 }
  0xfa   :  { %v118_v32 = vpop.f32.mrf.mxu3 }
  0xfb   :  { %v134_v33 = vrot.slane %v118_v32, 1  ;;  %v164_v45 = vrot.slane %v118_v32, 2 }
  0xfc   :  { %v109_v34 = vpop.f32.mrf.mxu1  ;;  %v115_v37 = vpop.f32.mrf.mxu2 }
  0xfd   :  { %v131_v35 = vrot.slane %v109_v34, 1  ;;  %v161_v36 = vrot.slane %v109_v34, 2  ;;  %144 = vrot.lane.b32.xlu2 %v134_v33, %s353_s19  ;;  %v133_v38 = vrot.slane %v115_v37, 1  ;;  %v163_v46 = vrot.slane %v115_v37, 2 }
  0xff   :  { %168 = vrot.lane.b32.xlu1 %v161_v36, %s354_s20  ;;  %138 = vrot.lane.b32.xlu0 %v131_v35, %s353_s19  ;;  %v313_v35 = vld [vmem:[%s451_s3] ss:$0 sm:$0xff]  ;;  %s355_s3 = smov [#allocation2]  }
 0x100   :  { %s277_s22 = sshll.u32 %s355_s3, 4  ;;  %s278_s22 = int_to_ptr.vmem [resolvable:$true] %s277_s22 }
 0x104   :  { %v112_v39 = vpop.f32.mrf.mxu1  ;;  %v121_v40 = vpop.f32.mrf.mxu3 }
 0x105   :  { %v132_v41 = vrot.slane %v112_v39, 1  ;;  %v165_v42 = vrot.slane %v121_v40, 2  ;;  %v162_v43 = vrot.slane %v112_v39, 2  ;;  %v135_v44 = vrot.slane %v121_v40, 1 }
 0x107   :  { %142 = vrot.lane.b32.xlu0 %v133_v38, %s353_s19  ;;  %140 = vrot.lane.b32.xlu1 %v132_v41, %s353_s19 }
 0x108   :  { %176 = vrot.lane.b32.xlu2 %v165_v42, %s354_s20 }
 0x10f   :  { %170 = vrot.lane.b32.xlu0 %v162_v43, %s354_s20  ;;  %146 = vrot.lane.b32.xlu1 %v135_v44, %s353_s19 }
 0x117   :  { %172 = vrot.lane.b32.xlu0 %v163_v46, %s354_s20  ;;  %174 = vrot.lane.b32.xlu1 %v164_v45, %s354_s20 }
 0x141   :  { %v137_v47 = vpop.permute.xlu2 %136 }
 0x142   :  { %v154_v52 = vadd.f32 %v137_v47, %v106_v29 }
 0x149   :  { %v167_v50 = vpop.permute.xlu2 %166 }
 0x14a   :  { %v184_v54 = vadd.f32 %v167_v50, %v154_v52 }
 0x14c   :  { %v191_v57 = vsel %vm190_vm1, %v184_v54, -inf }
 0x14d   :  { %v192_v61 = vrot.slane %v191_v57, 4 }
 0x14f   :  { %v193_v63 = vmax.f32 %v191_v57, %v192_v61 }
 0x151   :  { %v194_v7 = vrot.slane %v193_v63, 2 }
 0x153   :  { %v195_v15 = vmax.f32 %v193_v63, %v194_v7 }
 0x155   :  { %v196_v27 = vrot.slane %v195_v15, 1 }
 0x157   :  { %v145_v60 = vpop.permute.xlu2 %144 }
 0x158   :  { %v158_v16 = vadd.f32 %v145_v60, %v118_v32 }
 0x162   :  { %v177_v6 = vpop.permute.xlu2 %176 }
 0x171   :  { %v169_v48 = vpop.permute.xlu1 %168  ;;  %v139_v49 = vpop.permute.xlu0 %138 }
 0x172   :  { %v155_v51 = vadd.f32 %v139_v49, %v109_v34 }
 0x174   :  { %v185_v53 = vadd.f32 %v169_v48, %v155_v51 }
 0x176   :  { %v198_v55 = vsel %vm190_vm1, %v185_v53, -inf }
 0x177   :  { %v199_v56 = vrot.slane %v198_v55, 4 }
 0x179   :  { %v143_v58 = vpop.permute.xlu0 %142  ;;  %v141_v59 = vpop.permute.xlu1 %140  ;;  %v200_v62 = vmax.f32 %v198_v55, %v199_v56 }
 0x17a   :  { %v156_v1 = vadd.f32 %v141_v59, %v112_v39  ;;  %v157_v18 = vadd.f32 %v143_v58, %v115_v37 }
 0x17b   :  { %v201_v0 = vrot.slane %v200_v62, 2 }
 0x17d   :  { %v202_v8 = vmax.f32 %v200_v62, %v201_v0 }
 0x17f   :  { %v203_v17 = vrot.slane %v202_v8, 1 }
 0x181   :  { %v171_v2 = vpop.permute.xlu0 %170  ;;  %v147_v3 = vpop.permute.xlu1 %146  ;;  %v204_v28 = vmax.f32 %v202_v8, %v203_v17 }
 0x182   :  { %v186_v4 = vadd.f32 %v171_v2, %v156_v1  ;;  %v159_v5 = vadd.f32 %v147_v3, %v121_v40  ;;  %v197_v40 = vmax.f32 %v195_v15, %v196_v27 }
 0x183   :  { %v238_v41 = vadd.f32 %v313_v35, %v204_v28 }
 0x184   :  { %v205_v9 = vsel %vm190_vm1, %v186_v4, -inf  ;;  %v189_v10 = vadd.f32 %v177_v6, %v159_v5  ;;  %v237_v48 = vadd.f32 %v313_v35, %v197_v40 }
 0x185   :  { %v206_v11 = vrot.slane %v205_v9, 4  ;;  %314 = vtanh.f32 %v238_v41 }
 0x186   :  { %v226_v12 = vsel %vm190_vm1, %v189_v10, -inf }
 0x187   :  { %v207_v13 = vmax.f32 %v205_v9, %v206_v11  ;;  %v227_v14 = vrot.slane %v226_v12, 4 }
 0x189   :  { %v208_v19 = vrot.slane %v207_v13, 2  ;;  %v228_v20 = vmax.f32 %v226_v12, %v227_v14  ;;  %v173_v21 = vpop.permute.xlu0 %172  ;;  %v175_v22 = vpop.permute.xlu1 %174 }
 0x18a   :  { %v187_v23 = vadd.f32 %v173_v21, %v157_v18  ;;  %v188_v24 = vadd.f32 %v175_v22, %v158_v16 }
 0x18b   :  { %v209_v25 = vmax.f32 %v207_v13, %v208_v19  ;;  %v229_v26 = vrot.slane %v228_v20, 2  ;;  %v315_v56 = vpop.eup %314 }
 0x18c   :  { %v212_v29 = vsel %vm190_vm1, %v187_v23, -inf  ;;  %v219_v30 = vsel %vm190_vm1, %v188_v24, -inf  ;;  %v255_v58 = vrot.slane %v315_v56, 7 }
 0x18d   :  { %v210_v31 = vrot.slane %v209_v25, 1  ;;  %v230_v33 = vmax.f32 %v228_v20, %v229_v26  ;;  %v213_v34 = vrot.slane %v212_v29, 4  ;;  %v220_v32 = vrot.slane %v219_v30, 4 }
 0x18f   :  { %v211_v36 = vmax.f32 %v209_v25, %v210_v31  ;;  %v231_v37 = vrot.slane %v230_v33, 1  ;;  %v214_v38 = vmax.f32 %v212_v29, %v213_v34  ;;  %v221_v39 = vmax.f32 %v219_v30, %v220_v32 }
 0x191   :  { %v215_v42 = vrot.slane %v214_v38, 2  ;;  %v222_v43 = vrot.slane %v221_v39, 2  ;;  %v239_v44 = vadd.f32 %v313_v35, %v211_v36  ;;  %v232_v45 = vmax.f32 %v230_v33, %v231_v37 }
 0x193   :  { %v216_v46 = vmax.f32 %v214_v38, %v215_v42  ;;  %v223_v47 = vmax.f32 %v221_v39, %v222_v43  ;;  %316 = vtanh.f32 %v239_v44  ;;  %v242_v51 = vadd.f32 %v313_v35, %v232_v45 }
 0x194   :  { %318 = vtanh.f32 %v237_v48 }
 0x195   :  { %v217_v49 = vrot.slane %v216_v46, 1  ;;  %v224_v50 = vrot.slane %v223_v47, 1  ;;  %320 = vtanh.f32 %v242_v51 }
 0x197   :  { %v218_v52 = vmax.f32 %v216_v46, %v217_v49  ;;  %v225_v53 = vmax.f32 %v223_v47, %v224_v50 }
 0x199   :  { %v240_v54 = vadd.f32 %v313_v35, %v218_v52  ;;  %v241_v55 = vadd.f32 %v313_v35, %v225_v53  ;;  %v317_v57 = vpop.eup %316 }
 0x19a   :  { %v319_v59 = vpop.eup %318  ;;  %v258_v60 = vrot.slane %v317_v57, 6 }
 0x19b   :  { %322 = vtanh.f32 %v240_v54  ;;  %v321_v61 = vpop.eup %320  ;;  %v257_v1 = vsel %vm256_vm2, %v255_v58, %v319_v59 }
 0x19c   :  { %324 = vtanh.f32 %v241_v55  ;;  %v260_v2 = vsel %vm259_vm3, %v258_v60, %v257_v1  ;;  %v267_v5 = vrot.slane %v321_v61, 3 }
 0x1a1   :  { %v323_v62 = vpop.eup %322 }
 0x1a2   :  { %v325_v63 = vpop.eup %324  ;;  %v261_v0 = vrot.slane %v323_v62, 5 }
 0x1a3   :  { %v264_v3 = vrot.slane %v325_v63, 4 }
 0x1a4   :  { %v263_v4 = vsel %vm262_vm4, %v261_v0, %v260_v2 }
 0x1a5   :  { %v266_v6 = vsel %vm265_vm5, %v264_v3, %v263_v4 }
 0x1a6   :  { %v269_v7 = vsel %vm268_vm6, %v267_v5, %v266_v6 }
 0x1a7   :  { %271 = vst.msk [vmem:[#allocation2] sm:$0x3f] %vm190_vm1, %v269_v7 }
 0x1a8   :  { %282 = dma.vmem_to_hbm [thread:$0]  %s278_s22, 128, %s280_s25, [#allocation3]  }
 0x1a9   :  { %350 = dma.done.wait [#allocation3], 128  }
 0x1aa   :  { %351 = vsyncadd [#allocation3], 4294967168 }
 0x1ab   :  { %287 = vsyncpa [#allocation3], 1 }

</bundles_post_ra>
